<compile_context>
chip_gen: v7x
topology: tpu7x:2x2x1
jax: 0.10.0
libtpu: 0.0.40
codegen_flags: <defaults>
</compile_context>

<pallas_src>
import jax
import jax.numpy as jnp
from jax.experimental import pallas as pl
from jax.experimental.pallas import tpu as pltpu

LANE = 128
SUBLANE = 8
H1_PAD = 512   # 400 padded to a lane multiple
H2_PAD = 256   # 200 padded to a lane multiple


def _round_up(x, m):
    return (x + m - 1) // m * m


def actor_kernel(x_ref, w1_ref, b1_ref, w2_ref, b2_ref, w3_ref, b3_ref, o_ref):
    w_dtype = w1_ref.dtype
    # Layer 1: Linear + ReLU   (K = state_size, N = 512).  Matmul in the
    # param dtype (bf16 by default) on the MXU, f32 accumulation.
    h1 = jnp.dot(x_ref[...].astype(w_dtype), w1_ref[...],
                 preferred_element_type=jnp.float32)
    h1 = jnp.maximum(h1 + b1_ref[...].astype(jnp.float32), 0.0)
    # Layer 2: Linear + ReLU   (512 -> 256)
    h2 = jnp.dot(h1.astype(w_dtype), w2_ref[...],
                 preferred_element_type=jnp.float32)
    h2 = jnp.maximum(h2 + b2_ref[...].astype(jnp.float32), 0.0)
    # Output layer: Linear + Tanh   (256 -> 128, lane-dense unmasked store)
    h3 = jnp.dot(h2.astype(w_dtype), w3_ref[...],
                 preferred_element_type=jnp.float32)
    o_ref[...] = jnp.tanh(h3 + b3_ref[...].astype(jnp.float32)).astype(o_ref.dtype)


def init_params(key, state_size, action_size):
    """PyTorch nn.Linear default init: U(-1/sqrt(fan_in), 1/sqrt(fan_in)).
    Weights stored as (in_features, out_features); biases as (1, out_features)."""
    dims = [(state_size, 400), (400, 200), (200, action_size)]
    keys = jax.random.split(key, 2 * len(dims))
    params = {}
    for idx, (fan_in, fan_out) in enumerate(dims):
        bound = 1.0 / jnp.sqrt(jnp.float32(fan_in))
        params[f"w{idx + 1}"] = jax.random.uniform(
            keys[2 * idx], (fan_in, fan_out),
            minval=-bound, maxval=bound, dtype=jnp.float32)
        params[f"b{idx + 1}"] = jax.random.uniform(
            keys[2 * idx + 1], (1, fan_out),
            minval=-bound, maxval=bound, dtype=jnp.float32)
    return params


def pad_params(params, state_size, action_size, param_dtype=jnp.bfloat16):
    """Zero-pad hidden/action dims to lane-aligned sizes (state dim is NOT
    padded).  Zero padding keeps padded h1/h2 columns exactly 0 after ReLU,
    so sliced outputs match the unpadded network."""
    a_pad = _round_up(max(action_size, 1), LANE)

    def pad2(a, shape):
        out = jnp.zeros(shape, param_dtype)
        return out.at[: a.shape[0], : a.shape[1]].set(a.astype(param_dtype))

    return {
        "w1": pad2(params["w1"], (state_size, H1_PAD)),
        "b1": pad2(params["b1"], (1, H1_PAD)),
        "w2": pad2(params["w2"], (H1_PAD, H2_PAD)),
        "b2": pad2(params["b2"], (1, H2_PAD)),
        "w3": pad2(params["w3"], (H2_PAD, a_pad)),
        "b3": pad2(params["b3"], (1, a_pad)),
    }


def actor_forward(x, padded_params, state_size, action_size, *, batch_tile=512):
    """Actor MLP forward as a single fused Pallas kernel.

    x: (B, state_size) float32.  Returns (B, action_size) float32.
    """
    B, S = x.shape
    assert S == state_size
    p = padded_params
    a_pad = p["w3"].shape[1]

    # Batch tiling: one grid step for the common small-batch RL case; split
    # into ~batch_tile-row tiles (pipelined, TC-parallel on v7x) only when the
    # batch is large enough that each step amortizes the ~0.35 us overhead.
    if B <= batch_tile:
        n_steps = 1
        tb = _round_up(B, SUBLANE)
    else:
        n_steps = pl.cdiv(B, batch_tile)
        tb = _round_up(pl.cdiv(B, n_steps), SUBLANE)
    b_pad = n_steps * tb

    # Skip the wrapper-side pad copy entirely when the batch is already
    # aligned; otherwise pad by at most a few sublane rows per step.
    if b_pad == B:
        x_in = x
    else:
        x_in = jnp.zeros((b_pad, S), x.dtype).at[:B].set(x)

    def const_spec(shape):
        # Whole parameter resident in VMEM; constant block index -> no
        # re-DMA across grid steps.
        return pl.BlockSpec(shape, lambda i: (0, 0))

    flops = 2 * b_pad * (S * H1_PAD + H1_PAD * H2_PAD + H2_PAD * a_pad)
    bytes_accessed = (
        x_in.size * x_in.dtype.itemsize
        + b_pad * a_pad * 4
        + sum(int(v.size) * v.dtype.itemsize for v in p.values())
    )
    cost = pl.CostEstimate(flops=flops,
                           transcendentals=b_pad * a_pad,   # tanh
                           bytes_accessed=bytes_accessed)

    out_padded = pl.pallas_call(
        actor_kernel,
        out_shape=jax.ShapeDtypeStruct((b_pad, a_pad), jnp.float32),
        grid_spec=pl.GridSpec(
            grid=(n_steps,),
            in_specs=[
                pl.BlockSpec((tb, S), lambda i: (i, 0)),   # x batch tile
                const_spec(p["w1"].shape),
                const_spec(p["b1"].shape),
                const_spec(p["w2"].shape),
                const_spec(p["b2"].shape),
                const_spec(p["w3"].shape),
                const_spec(p["b3"].shape),
            ],
            out_specs=pl.BlockSpec((tb, a_pad), lambda i: (i, 0)),
        ),
        compiler_params=pltpu.CompilerParams(
            dimension_semantics=("parallel",),
        ),
        cost_estimate=cost,
    )(x_in, p["w1"], p["b1"], p["w2"], p["b2"], p["w3"], p["b3"])

    return out_padded[:B, :action_size]


def actor_forward_ref(x, params):
    """Pure-JAX f32 reference (unpadded) for correctness checks."""
    h = jnp.maximum(x @ params["w1"] + params["b1"], 0.0)
    h = jnp.maximum(h @ params["w2"] + params["b2"], 0.0)
    return jnp.tanh(h @ params["w3"] + params["b3"])


if __name__ == "__main__":
    key = jax.random.PRNGKey(0)
    k_param, k_x = jax.random.split(key)

    batch = 8
    state_size = 8      # e.g. LunarLanderContinuous observation dim
    action_size = 4     # small action space

    params = init_params(k_param, state_size, action_size)
    x = jax.random.normal(k_x, (batch, state_size), dtype=jnp.float32)
    ref = actor_forward_ref(x, params)

    # Default fast path: bf16 weights on the MXU (f32 accumulation) ->
    # relaxed tolerance vs the f32 reference.
    padded_bf16 = pad_params(params, state_size, action_size,
                             param_dtype=jnp.bfloat16)
    out_bf16 = jax.block_until_ready(
        actor_forward(x, padded_bf16, state_size, action_size))
    assert out_bf16.shape == (batch, action_size)
    assert jnp.allclose(out_bf16, ref, atol=5e-2, rtol=0.0), \
        float(jnp.max(jnp.abs(out_bf16 - ref)))

    # f32 weight path: exact match with the reference.
    padded_f32 = pad_params(params, state_size, action_size,
                            param_dtype=jnp.float32)
    out_f32 = jax.block_until_ready(
        actor_forward(x, padded_f32, state_size, action_size))
    assert jnp.allclose(out_f32, ref, atol=1e-5, rtol=1e-5)

    print("KERNEL_OK")
</pallas_src>

<mosaic_0001>
module attributes {stable_mosaic.version = 11 : i64} {
  func.func @actor_kernel(%arg0: i32, %arg1: memref<8x8xf32, #tpu.memory_space<vmem>>, %arg2: memref<8x512xbf16, #tpu.memory_space<vmem>>, %arg3: memref<1x512xbf16, #tpu.memory_space<vmem>>, %arg4: memref<512x256xbf16, #tpu.memory_space<vmem>>, %arg5: memref<1x256xbf16, #tpu.memory_space<vmem>>, %arg6: memref<256x128xbf16, #tpu.memory_space<vmem>>, %arg7: memref<1x128xbf16, #tpu.memory_space<vmem>>, %arg8: memref<8x128xf32, #tpu.memory_space<vmem>>) attributes {dimension_semantics = [#tpu.dimension_semantics<parallel>], iteration_bounds = array<i64: 1>, scalar_prefetch = 0 : i64, scratch_operands = 0 : i64, tpu.core_type = #tpu.core_type<tc>, window_params = [{transform_indices = @transform_0, window_bounds = array<i64: 8, 8>}, {pipeline_mode = #tpu.pipeline_mode<synchronous>, transform_indices = @transform_1, window_bounds = array<i64: 8, 512>}, {pipeline_mode = #tpu.pipeline_mode<synchronous>, transform_indices = @transform_2, window_bounds = array<i64: 1, 512>}, {pipeline_mode = #tpu.pipeline_mode<synchronous>, transform_indices = @transform_3, window_bounds = array<i64: 512, 256>}, {pipeline_mode = #tpu.pipeline_mode<synchronous>, transform_indices = @transform_4, window_bounds = array<i64: 1, 256>}, {pipeline_mode = #tpu.pipeline_mode<synchronous>, transform_indices = @transform_5, window_bounds = array<i64: 256, 128>}, {pipeline_mode = #tpu.pipeline_mode<synchronous>, transform_indices = @transform_6, window_bounds = array<i64: 1, 128>}, {transform_indices = @transform_7, window_bounds = array<i64: 8, 128>}]} {
    %c0 = arith.constant 0 : index
    %c0_0 = arith.constant 0 : index
    %0 = vector.load %arg1[%c0, %c0_0] : memref<8x8xf32, #tpu.memory_space<vmem>>, vector<8x8xf32>
    %1 = arith.truncf %0 : vector<8x8xf32> to vector<8x8xbf16>
    %c0_1 = arith.constant 0 : index
    %c0_2 = arith.constant 0 : index
    %2 = vector.load %arg2[%c0_1, %c0_2] : memref<8x512xbf16, #tpu.memory_space<vmem>>, vector<8x512xbf16>
    %cst = arith.constant dense<0.000000e+00> : vector<8x512xf32>
    %3 = tpu.matmul %1, %2, %cst {dimension_numbers = #tpu.dot_dimension_numbers<[1], [0], [0], [1], [0, 0, 1, 1], [], []>} : vector<8x8xbf16>, vector<8x512xbf16>, vector<8x512xf32> -> vector<8x512xf32>
    %c0_3 = arith.constant 0 : index
    %c0_4 = arith.constant 0 : index
    %4 = vector.load %arg3[%c0_3, %c0_4] : memref<1x512xbf16, #tpu.memory_space<vmem>>, vector<1x512xbf16>
    %5 = arith.extf %4 : vector<1x512xbf16> to vector<1x512xf32>
    %6 = vector.broadcast %5 : vector<1x512xf32> to vector<8x512xf32>
    %7 = arith.addf %3, %6 : vector<8x512xf32>
    %cst_5 = arith.constant 0.000000e+00 : f32
    %8 = vector.broadcast %cst_5 : f32 to vector<8x512xf32>
    %9 = arith.maximumf %7, %8 : vector<8x512xf32>
    %10 = arith.truncf %9 : vector<8x512xf32> to vector<8x512xbf16>
    %c0_6 = arith.constant 0 : index
    %c0_7 = arith.constant 0 : index
    %11 = vector.load %arg4[%c0_6, %c0_7] : memref<512x256xbf16, #tpu.memory_space<vmem>>, vector<512x256xbf16>
    %cst_8 = arith.constant dense<0.000000e+00> : vector<8x256xf32>
    %12 = tpu.matmul %10, %11, %cst_8 {dimension_numbers = #tpu.dot_dimension_numbers<[1], [0], [0], [1], [0, 0, 1, 1], [], []>} : vector<8x512xbf16>, vector<512x256xbf16>, vector<8x256xf32> -> vector<8x256xf32>
    %c0_9 = arith.constant 0 : index
    %c0_10 = arith.constant 0 : index
    %13 = vector.load %arg5[%c0_9, %c0_10] : memref<1x256xbf16, #tpu.memory_space<vmem>>, vector<1x256xbf16>
    %14 = arith.extf %13 : vector<1x256xbf16> to vector<1x256xf32>
    %15 = vector.broadcast %14 : vector<1x256xf32> to vector<8x256xf32>
    %16 = arith.addf %12, %15 : vector<8x256xf32>
    %cst_11 = arith.constant 0.000000e+00 : f32
    %17 = vector.broadcast %cst_11 : f32 to vector<8x256xf32>
    %18 = arith.maximumf %16, %17 : vector<8x256xf32>
    %19 = arith.truncf %18 : vector<8x256xf32> to vector<8x256xbf16>
    %c0_12 = arith.constant 0 : index
    %c0_13 = arith.constant 0 : index
    %20 = vector.load %arg6[%c0_12, %c0_13] : memref<256x128xbf16, #tpu.memory_space<vmem>>, vector<256x128xbf16>
    %cst_14 = arith.constant dense<0.000000e+00> : vector<8x128xf32>
    %21 = tpu.matmul %19, %20, %cst_14 {dimension_numbers = #tpu.dot_dimension_numbers<[1], [0], [0], [1], [0, 0, 1, 1], [], []>} : vector<8x256xbf16>, vector<256x128xbf16>, vector<8x128xf32> -> vector<8x128xf32>
    %c0_15 = arith.constant 0 : index
    %c0_16 = arith.constant 0 : index
    %22 = vector.load %arg7[%c0_15, %c0_16] : memref<1x128xbf16, #tpu.memory_space<vmem>>, vector<1x128xbf16>
    %23 = arith.extf %22 : vector<1x128xbf16> to vector<1x128xf32>
    %24 = vector.broadcast %23 : vector<1x128xf32> to vector<8x128xf32>
    %25 = arith.addf %21, %24 : vector<8x128xf32>
    %26 = math.tanh %25 : vector<8x128xf32>
    %c0_17 = arith.constant 0 : index
    %c0_18 = arith.constant 0 : index
    %27 = vector.load %arg8[%c0_17, %c0_18] : memref<8x128xf32, #tpu.memory_space<vmem>>, vector<8x128xf32>
    tpu.vector_store %arg8[%c0_17, %c0_18], %26 {strides = array<i32>} : memref<8x128xf32, #tpu.memory_space<vmem>>, vector<8x128xf32>,
    return
  }
  func.func @transform_0(%arg0: i32) -> (i32, i32) {
    %c0_i32 = arith.constant 0 : i32
    %c0_i32_0 = arith.constant 0 : i32
    return %arg0, %c0_i32 : i32, i32
  }
  func.func @transform_1(%arg0: i32) -> (i32, i32) {
    %c0_i32 = arith.constant 0 : i32
    %c0_i32_0 = arith.constant 0 : i32
    %c0_i32_1 = arith.constant 0 : i32
    return %c0_i32, %c0_i32_0 : i32, i32
  }
  func.func @transform_2(%arg0: i32) -> (i32, i32) {
    %c0_i32 = arith.constant 0 : i32
    %c0_i32_0 = arith.constant 0 : i32
    %c0_i32_1 = arith.constant 0 : i32
    return %c0_i32, %c0_i32_0 : i32, i32
  }
  func.func @transform_3(%arg0: i32) -> (i32, i32) {
    %c0_i32 = arith.constant 0 : i32
    %c0_i32_0 = arith.constant 0 : i32
    %c0_i32_1 = arith.constant 0 : i32
    return %c0_i32, %c0_i32_0 : i32, i32
  }
  func.func @transform_4(%arg0: i32) -> (i32, i32) {
    %c0_i32 = arith.constant 0 : i32
    %c0_i32_0 = arith.constant 0 : i32
    %c0_i32_1 = arith.constant 0 : i32
    return %c0_i32, %c0_i32_0 : i32, i32
  }
  func.func @transform_5(%arg0: i32) -> (i32, i32) {
    %c0_i32 = arith.constant 0 : i32
    %c0_i32_0 = arith.constant 0 : i32
    %c0_i32_1 = arith.constant 0 : i32
    return %c0_i32, %c0_i32_0 : i32, i32
  }
  func.func @transform_6(%arg0: i32) -> (i32, i32) {
    %c0_i32 = arith.constant 0 : i32
    %c0_i32_0 = arith.constant 0 : i32
    %c0_i32_1 = arith.constant 0 : i32
    return %c0_i32, %c0_i32_0 : i32, i32
  }
  func.func @transform_7(%arg0: i32) -> (i32, i32) {
    %c0_i32 = arith.constant 0 : i32
    %c0_i32_0 = arith.constant 0 : i32
    return %arg0, %c0_i32 : i32, i32
  }
}

</mosaic_0001>

<bundles_post_ra>
// kernel: tpu_custom_call.1
= control target key start
LH: loop header
LB: loop body
LE: loop exit
PB: predicated region body
PF: predicated region fallthrough
CT: control target
= control target key end

     0   :  { %12 = vsyncpa [#allocation3], 0  ;;  %s1429_s0 = inlined_call_operand.hbm [shape: f32[8,8], index: 0, kind: input, shape index: {}]   ;;  %s1430_s1 = inlined_call_operand.hbm [shape: bf16[8,512], index: 1, kind: input, shape index: {}]   ;;  %s1431_s2 = inlined_call_operand.vmem [shape: bf16[1,512], index: 2, kind: input, shape index: {}]   ;;  %s1432_s3 = inlined_call_operand.hbm [shape: bf16[512,256], index: 3, kind: input, shape index: {}]   ;;  %s1433_s4 = inlined_call_operand.vmem [shape: bf16[1,256], index: 4, kind: input, shape index: {}]   ;;  %s1434_s5 = inlined_call_operand.hbm [shape: bf16[256,128], index: 5, kind: input, shape index: {}]   ;;  %s1435_s6 = inlined_call_operand.vmem [shape: bf16[1,128], index: 6, kind: input, shape index: {}]   ;;  %s1436_s7 = inlined_call_operand.hbm [shape: f32[8,128], index: 7, kind: output, shape index: {}]  }
   0x1   :  { %13 = vsyncpa [#allocation6], 0 }
   0x2   :  { %14 = vsyncpa [#allocation9], 0 }
   0x3   :  { %15 = vsyncpa [#allocation4], 0  ;;  %s1283_s24 = smov [#allocation5]   ;;  %s1284_s26 = smov [#allocation2]  }
   0x4   :  { %s32_s25 = sshll.u32 %s1283_s24, 4  ;;  %s22_s27 = sshll.u32 %s1284_s26, 4  ;;  %s33_s25 = int_to_ptr.vmem [resolvable:$true] %s32_s25  ;;  %s23_s27 = int_to_ptr.vmem [resolvable:$true] %s22_s27 }
   0x5   :  { %s1165_s30 = scalar_lea.hbm %s1430_s1, 256 }
   0x6   :  { %p1166_p0 = scmp.ne.s32.totalorder %s1430_s1, %s1165_s30  ;;  %p1169_p1 = scmp.lt.u32.totalorder %s1165_s30, %s1430_s1 }
   0x8   :  { %p1171_p2 = pnand %p1169_p1, %p1166_p0 }
   0xa   :  { %1174 = shalt.err (!%p1171_p2)
}
   0xb   :  { %s1175_s12 = scalar_lea.vmem %s33_s25, 256  ;;  %p1180_p4 = scmp.lt.s32.totalorder %s33_s25, %s33_s25 }
   0xc   :  { %p1176_p3 = scmp.ne.s32.totalorder %s33_s25, %s1175_s12  ;;  %p1181_p5 = scmp.lt.s32.totalorder %s1175_s12, %s1175_s12 }
   0xe   :  { %p1182_p6 = por %p1181_p5, %p1180_p4 }
  0x10   :  { %p1183_p7 = pnand %p1182_p6, %p1176_p3 }
  0x12   :  { %1186 = shalt.err (!%p1183_p7)
}
  0x13   :  { %35 = dma.hbm_to_vmem [thread:$0]  %s1430_s1, 256, %s33_s25, [#allocation6]  }
  0x14   :  { %s1187_s17 = scalar_lea.hbm %s1429_s0, 128 }
  0x15   :  { %p1188_p8 = scmp.ne.s32.totalorder %s1429_s0, %s1187_s17  ;;  %p1191_p9 = scmp.lt.u32.totalorder %s1187_s17, %s1429_s0 }
  0x17   :  { %p1193_p10 = pnand %p1191_p9, %p1188_p8 }
  0x19   :  { %1196 = shalt.err (!%p1193_p10)
}
  0x1a   :  { %s1197_s22 = scalar_lea.vmem %s23_s27, 128  ;;  %p1202_p12 = scmp.lt.s32.totalorder %s23_s27, %s23_s27 }
  0x1b   :  { %p1198_p11 = scmp.ne.s32.totalorder %s23_s27, %s1197_s22  ;;  %p1203_p13 = scmp.lt.s32.totalorder %s1197_s22, %s1197_s22 }
  0x1d   :  { %p1204_p0 = por %p1203_p13, %p1202_p12 }
  0x1f   :  { %p1205_p1 = pnand %p1204_p0, %p1198_p11 }
  0x21   :  { %1208 = shalt.err (!%p1205_p1)
}
  0x22   :  { %25 = dma.hbm_to_vmem [thread:$0]  %s1429_s0, 128, %s23_s27, [#allocation3]  }
  0x23   :  { %s1285_s24 = smov [#allocation7]   ;;  %s1209_s29 = scalar_lea.hbm %s1432_s3, 8192 }
  0x24   :  { %s43_s25 = sshll.u32 %s1285_s24, 4  ;;  %p1210_p2 = scmp.ne.s32.totalorder %s1432_s3, %s1209_s29  ;;  %s44_s25 = int_to_ptr.vmem [resolvable:$true] %s43_s25 }
  0x25   :  { %p1213_p3 = scmp.lt.u32.totalorder %s1209_s29, %s1432_s3 }
  0x27   :  { %p1215_p4 = pnand %p1213_p3, %p1210_p2 }
  0x29   :  { %1218 = shalt.err (!%p1215_p4)
}
  0x2a   :  { %s1219_s11 = scalar_lea.vmem %s44_s25, 8192  ;;  %p1224_p6 = scmp.lt.s32.totalorder %s44_s25, %s44_s25 }
  0x2b   :  { %p1220_p5 = scmp.ne.s32.totalorder %s44_s25, %s1219_s11  ;;  %p1225_p7 = scmp.lt.s32.totalorder %s1219_s11, %s1219_s11 }
  0x2d   :  { %p1226_p8 = por %p1225_p7, %p1224_p6 }
  0x2f   :  { %p1227_p9 = pnand %p1226_p8, %p1220_p5 }
  0x31   :  { %1230 = shalt.err (!%p1227_p9)
}
  0x32   :  { %s1286_s0 = smov 128   ;;  %s1287_s27 = smov 8  }
  0x33   :  { %49 = dma.hbm_to_vmem [thread:$0]  %s1432_s3, 8192, %s44_s25, [#allocation6], %s1286_s0, %s1286_s0, %s1287_s27  }
  0x34   :  { %s1288_s14 = smov [#allocation8]   ;;  %s1231_s18 = scalar_lea.hbm %s1434_s5, 2048 }
  0x35   :  { %s57_s15 = sshll.u32 %s1288_s14, 4  ;;  %p1232_p10 = scmp.ne.s32.totalorder %s1434_s5, %s1231_s18  ;;  %s58_s15 = int_to_ptr.vmem [resolvable:$true] %s57_s15 }
  0x36   :  { %p1235_p11 = scmp.lt.u32.totalorder %s1231_s18, %s1434_s5 }
  0x38   :  { %p1237_p12 = pnand %p1235_p11, %p1232_p10 }
  0x3a   :  { %1240 = shalt.err (!%p1237_p12)
}
  0x3b   :  { %s1241_s1 = scalar_lea.vmem %s58_s15, 2048  ;;  %p1246_p0 = scmp.lt.s32.totalorder %s58_s15, %s58_s15 }
  0x3c   :  { %p1242_p13 = scmp.ne.s32.totalorder %s58_s15, %s1241_s1  ;;  %p1247_p1 = scmp.lt.s32.totalorder %s1241_s1, %s1241_s1 }
  0x3e   :  { %p1248_p2 = por %p1247_p1, %p1246_p0 }
  0x40   :  { %p1249_p3 = pnand %p1248_p2, %p1242_p13 }
  0x42   :  { %1252 = shalt.err (!%p1249_p3)
}
  0x43   :  { %s1289_s3 = smov 64   ;;  %s1290_s23 = smov 4  }
  0x44   :  { %63 = dma.hbm_to_vmem [thread:$0]  %s1434_s5, 2048, %s58_s15, [#allocation9], %s1289_s3, %s1289_s3, %s1290_s23  }
  0x45   :  { %1275 = dma.done.wait [#allocation3], 128  }
  0x46   :  { %1276 = vsyncadd [#allocation3], 4294967168 }
  0x47   :  { %1277 = dma.done.wait [#allocation6], 8448  }
  0x48   :  { %1278 = vsyncadd [#allocation6], 4294958848 }
  0x49   :  { %1279 = dma.done.wait [#allocation9], 2048  }
  0x4a   :  { %1280 = vsyncadd [#allocation9], 4294965248  ;;  %v1291_v0 = vmov 0   ;;  %v81_v1 = vld [vmem:[#allocation5] sm:$0xff]  ;;  %vm136_vm0 = vcmask 1043456   ;;  %v79_v2 = vld [vmem:[#allocation2] sm:$0xff] }
  0x4b   :  { %181 = vmatprep.mubr.bf16.mxu0 %v1291_v0  ;;  %v82_v3 = vld [vmem:[#allocation5 + $0x8] sm:$0xff]  ;;  %v924_v4 = vcombine.high %v81_v1, %v81_v1  ;;  %v923_v5 = vcombine.low %v81_v1, %v81_v1  ;;  %v1051_v7 = vld [vmem:[#allocation7 + $0x4] ss:$8 sps:$4 sm:$0xff]   ;;  %v1053_v9 = vld [vmem:[#allocation7] ss:$8 sps:$4 sm:$0xff]   ;;  %v80_v11 = vpack.c.bf16 %v79_v2, %v79_v2  ;;  %vm132_vm1 = vcmask 64512  }
  0x4c   :  { %v926_v6 = vcombine.high %v82_v3, %v82_v3  ;;  %v925_v8 = vcombine.low %v82_v3, %v82_v3  ;;  %644 = vmatprep.subr.bf16.mxu1 %v1051_v7  ;;  %v1054_v12 = vld [vmem:[#allocation7 + $0x14] ss:$8 sps:$4 sm:$0xff]   ;;  %v1056_v14 = vld [vmem:[#allocation7 + $0x10] ss:$8 sps:$4 sm:$0xff]   ;;  %v1061_v15 = vld [vmem:[#allocation7 + $0x104] ss:$8 sps:$4 sm:$0xff]  }
  0x4d   :  { %927 = vmatprep.subr.msk.bf16.mxu0 %vm136_vm0, %v924_v4  ;;  %v138_v10 = vsel %vm136_vm0, %v923_v5, 0  ;;  %645 = vmatpush1.bf16.msra.mxu1 %v1053_v9  ;;  %v1057_v16 = vld [vmem:[#allocation7 + $0x24] ss:$8 sps:$4 sm:$0xff]   ;;  %v1062_v17 = vld [vmem:[#allocation7 + $0x20] ss:$8 sps:$4 sm:$0xff]   ;;  %s1292_s30 = smov [#allocation10]  }
  0x4e   :  { %150 = vmatpush1.bf16.msra.mxu0 %v138_v10  ;;  %v144_v13 = vsel %vm136_vm0, %v925_v8, 0  ;;  %646 = vmatprep.subr.bf16.mxu1 %v1054_v12  ;;  %v1063_v18 = vld [vmem:[#allocation7 + $0x34] ss:$8 sps:$4 sm:$0xff]   ;;  %v1059_v19 = vld [vmem:[#allocation7 + $0x100] ss:$8 sps:$4 sm:$0xff]   ;;  %v86_v12 = vlaneseq  ;;  %s912_s8 = sshll.u32 %s1292_s30, 4  ;;  %s913_s8 = int_to_ptr.vmem [resolvable:$true] %s912_s8 }
  0x4f   :  { %929 = vmatprep.subr.msk.bf16.mxu0 %vm136_vm0, %v926_v6  ;;  %v1067_v20 = vld [vmem:[#allocation7 + $0x114] ss:$8 sps:$4 sm:$0xff]   ;;  %v1068_v21 = vld [vmem:[#allocation7 + $0x30] ss:$8 sps:$4 sm:$0xff]   ;;  %v1069_v22 = vld [vmem:[#allocation7 + $0x44] ss:$8 sps:$4 sm:$0xff]   ;;  %p1258_p5 = scmp.lt.s32.totalorder %s913_s8, %s913_s8 }
  0x50   :  { %v1065_v23 = vld [vmem:[#allocation7 + $0x110] ss:$8 sps:$4 sm:$0xff]   ;;  %v1073_v24 = vld [vmem:[#allocation7 + $0x124] ss:$8 sps:$4 sm:$0xff]   ;;  %v1074_v25 = vld [vmem:[#allocation7 + $0x40] ss:$8 sps:$4 sm:$0xff]  }
  0x51   :  { %928 = vmatmul.mubr.msk.bf16.vlgmr.msra.gmra.mrb[0].mxu0 %vm132_vm1, %v80_v11  ;;  %647 = vmatpush1.bf16.msra.mxu1 %v1056_v14  ;;  %v1075_v26 = vld [vmem:[#allocation7 + $0x54] ss:$8 sps:$4 sm:$0xff]   ;;  %v1071_v27 = vld [vmem:[#allocation7 + $0x120] ss:$8 sps:$4 sm:$0xff]   ;;  %v1080_v29 = vld [vmem:[#allocation7 + $0x50] ss:$8 sps:$4 sm:$0xff]  }
  0x52   :  { %191 = vmatpush1.bf16.msra.mxu0 %v144_v13  ;;  %222 = vmatprep.mubr.bf16.mxu0 %v1291_v0  ;;  %v1079_v28 = vld [vmem:[#allocation7 + $0x134] ss:$8 sps:$4 sm:$0xff]   ;;  %v1081_v30 = vld [vmem:[#allocation7 + $0x64] ss:$8 sps:$4 sm:$0xff]   ;;  %v1077_v31 = vld [vmem:[#allocation7 + $0x130] ss:$8 sps:$4 sm:$0xff]  }
  0x53   :  { %685 = vmatprep.subr.bf16.mxu0 %v1061_v15  ;;  %648 = vmatprep.subr.bf16.mxu1 %v1057_v16  ;;  %v1085_v32 = vld [vmem:[#allocation7 + $0x144] ss:$8 sps:$4 sm:$0xff]   ;;  %v1086_v33 = vld [vmem:[#allocation7 + $0x60] ss:$8 sps:$4 sm:$0xff]   ;;  %v1087_v34 = vld [vmem:[#allocation7 + $0x74] ss:$8 sps:$4 sm:$0xff]  }
  0x54   :  { %v1083_v35 = vld [vmem:[#allocation7 + $0x140] ss:$8 sps:$4 sm:$0xff]   ;;  %v1091_v36 = vld [vmem:[#allocation7 + $0x154] ss:$8 sps:$4 sm:$0xff]   ;;  %v1092_v37 = vld [vmem:[#allocation7 + $0x70] ss:$8 sps:$4 sm:$0xff]  }
  0x55   :  { %649 = vmatpush1.bf16.msra.mxu1 %v1062_v17  ;;  %v1093_v38 = vld [vmem:[#allocation7 + $0x84] ss:$8 sps:$4 sm:$0xff]   ;;  %v1089_v39 = vld [vmem:[#allocation7 + $0x150] ss:$8 sps:$4 sm:$0xff]   ;;  %v1098_v41 = vld [vmem:[#allocation7 + $0x80] ss:$8 sps:$4 sm:$0xff]  }
  0x56   :  { %650 = vmatprep.subr.bf16.mxu1 %v1063_v18  ;;  %v1097_v40 = vld [vmem:[#allocation7 + $0x164] ss:$8 sps:$4 sm:$0xff]   ;;  %v1099_v42 = vld [vmem:[#allocation7 + $0x94] ss:$8 sps:$4 sm:$0xff]   ;;  %v1095_v43 = vld [vmem:[#allocation7 + $0x160] ss:$8 sps:$4 sm:$0xff]  }
  0x57   :  { %v1103_v44 = vld [vmem:[#allocation7 + $0x174] ss:$8 sps:$4 sm:$0xff]   ;;  %v1104_v45 = vld [vmem:[#allocation7 + $0x90] ss:$8 sps:$4 sm:$0xff]   ;;  %v1105_v46 = vld [vmem:[#allocation7 + $0xa4] ss:$8 sps:$4 sm:$0xff]  }
  0x58   :  { %v1101_v47 = vld [vmem:[#allocation7 + $0x170] ss:$8 sps:$4 sm:$0xff]   ;;  %v1109_v48 = vld [vmem:[#allocation7 + $0x184] ss:$8 sps:$4 sm:$0xff]   ;;  %v1110_v49 = vld [vmem:[#allocation7 + $0xa0] ss:$8 sps:$4 sm:$0xff]  }
  0x59   :  { %930 = vmatmul.mubr.msk.bf16.vlgmr.msra.gmra.mrb[4].mxu0 %vm132_vm1, %v80_v11  ;;  %651 = vmatpush1.bf16.msra.mxu1 %v1068_v21  ;;  %v1111_v50 = vld [vmem:[#allocation7 + $0xb4] ss:$8 sps:$4 sm:$0xff]   ;;  %v1107_v51 = vld [vmem:[#allocation7 + $0x180] ss:$8 sps:$4 sm:$0xff]   ;;  %v1116_v53 = vld [vmem:[#allocation7 + $0xb0] ss:$8 sps:$4 sm:$0xff]  }
  0x5a   :  { %686 = vmatpush1.bf16.msra.mxu0 %v1059_v19  ;;  %652 = vmatprep.subr.bf16.mxu1 %v1069_v22  ;;  %v1115_v52 = vld [vmem:[#allocation7 + $0x194] ss:$8 sps:$4 sm:$0xff]   ;;  %v1117_v54 = vld [vmem:[#allocation7 + $0xc4] ss:$8 sps:$4 sm:$0xff]   ;;  %v1113_v55 = vld [vmem:[#allocation7 + $0x190] ss:$8 sps:$4 sm:$0xff]  }
  0x5b   :  { %687 = vmatprep.subr.bf16.mxu0 %v1067_v20  ;;  %v1121_v56 = vld [vmem:[#allocation7 + $0x1a4] ss:$8 sps:$4 sm:$0xff]   ;;  %v1122_v57 = vld [vmem:[#allocation7 + $0xc0] ss:$8 sps:$4 sm:$0xff]   ;;  %v1123_v58 = vld [vmem:[#allocation7 + $0xd4] ss:$8 sps:$4 sm:$0xff]  }
  0x5c   :  { %v1119_v59 = vld [vmem:[#allocation7 + $0x1a0] ss:$8 sps:$4 sm:$0xff]   ;;  %v1127_v60 = vld [vmem:[#allocation7 + $0x1b4] ss:$8 sps:$4 sm:$0xff]   ;;  %v1128_v61 = vld [vmem:[#allocation7 + $0xd0] ss:$8 sps:$4 sm:$0xff]  }
  0x5d   :  { %653 = vmatpush1.bf16.msra.mxu1 %v1074_v25  ;;  %v1125_v62 = vld [vmem:[#allocation7 + $0x1b0] ss:$8 sps:$4 sm:$0xff]   ;;  %v1129_v63 = vld [vmem:[#allocation7 + $0xe4] ss:$8 sps:$4 sm:$0xff]   ;;  %v1131_v1 = vld [vmem:[#allocation7 + $0x1c0] ss:$8 sps:$4 sm:$0xff]  }
  0x5e   :  { %688 = vmatpush1.bf16.msra.mxu0 %v1065_v23  ;;  %654 = vmatprep.subr.bf16.mxu1 %v1075_v26  ;;  %v1133_v0 = vld [vmem:[#allocation7 + $0x1c4] ss:$8 sps:$4 sm:$0xff]   ;;  %v1134_v2 = vld [vmem:[#allocation7 + $0xe0] ss:$8 sps:$4 sm:$0xff]   ;;  %v1135_v3 = vld [vmem:[#allocation7 + $0xf4] ss:$8 sps:$4 sm:$0xff]  }
  0x5f   :  { %689 = vmatprep.subr.bf16.mxu0 %v1073_v24  ;;  %v1139_v4 = vld [vmem:[#allocation7 + $0x1d4] ss:$8 sps:$4 sm:$0xff]   ;;  %v1137_v5 = vld [vmem:[#allocation7 + $0x1d0] ss:$8 sps:$4 sm:$0xff]   ;;  %v1143_v7 = vld [vmem:[#allocation7 + $0x1e4] ss:$8 sps:$4 sm:$0xff]  }
  0x60   :  { %v1140_v6 = vld [vmem:[#allocation7 + $0xf0] ss:$8 sps:$4 sm:$0xff]   ;;  %v1141_v8 = vld [vmem:[#allocation7 + $0x1e0] ss:$8 sps:$4 sm:$0xff]   ;;  %v1146_v9 = vld [vmem:[#allocation7 + $0x1f4] ss:$8 sps:$4 sm:$0xff]  }
  0x61   :  { %655 = vmatpush1.bf16.msra.mxu1 %v1080_v29  ;;  %v1144_v10 = vld [vmem:[#allocation7 + $0x1f0] ss:$8 sps:$4 sm:$0xff]   ;;  %v1147_v11 = vld [vmem:[#allocation8 + $0x40] sm:$0xff]   ;;  %v1387_v13 = vshrl.u32 %v86_v12, 7  ;;  %v83_v14 = vld [vmem:[%s1431_s2] sm:$0xf] }
  0x62   :  { %690 = vmatpush1.bf16.msra.mxu0 %v1071_v27  ;;  %656 = vmatprep.subr.bf16.mxu1 %v1081_v30  ;;  %v84_v15 = vunpack.c.l.bf16 %v83_v14  ;;  %s1253_s9 = scalar_lea.vmem %s913_s8, 128 }
  0x63   :  { %691 = vmatprep.subr.bf16.mxu0 %v1079_v28  ;;  %v1393_v16 = vsub.s32 0, %v1387_v13  ;;  %v92_v17 = vsub.s32 2, %v1387_v13  ;;  %v96_v21 = vsub.s32 4, %v1387_v13  ;;  %v100_v23 = vsub.s32 6, %v1387_v13  ;;  %p1254_p4 = scmp.ne.s32.totalorder %s913_s8, %s1253_s9  ;;  %p1259_p6 = scmp.lt.s32.totalorder %s1253_s9, %s1253_s9 }
  0x65   :  { %657 = vmatpush1.bf16.msra.mxu1 %v1086_v33  ;;  %v89_v18 = vrot.slane %v84_v15, %v1393_v16  ;;  %v93_v19 = vrot.slane %v84_v15, %v92_v17  ;;  %v97_v27 = vrot.slane %v84_v15, %v96_v21  ;;  %v101_v30 = vrot.slane %v84_v15, %v100_v23  ;;  %p1260_p7 = por %p1259_p6, %p1258_p5 }
  0x66   :  { %692 = vmatpush1.bf16.msra.mxu0 %v1077_v31  ;;  %658 = vmatprep.subr.bf16.mxu1 %v1087_v34 }
  0x67   :  { %693 = vmatprep.subr.bf16.mxu0 %v1085_v32  ;;  %v109_v20 = vrot.slane %v89_v18, %v1393_v16  ;;  %v113_v22 = vrot.slane %v93_v19, %v1393_v16  ;;  %v117_v34 = vrot.slane %v97_v27, %v1393_v16  ;;  %p1261_p8 = pnand %p1260_p7, %p1254_p4 }
  0x69   :  { %659 = vmatpush1.bf16.msra.mxu1 %v1092_v37  ;;  %v1148_v37 = vld [vmem:[#allocation8] sm:$0xff]  }
  0x6a   :  { %694 = vmatpush1.bf16.msra.mxu0 %v1083_v35  ;;  %660 = vmatprep.subr.bf16.mxu1 %v1093_v38 }
  0x6b   :  { %695 = vmatprep.subr.bf16.mxu0 %v1091_v36  ;;  %v121_v36 = vrot.slane %v101_v30, %v1393_v16 }
  0x6d   :  { %661 = vmatpush1.bf16.msra.mxu1 %v1098_v41 }
  0x6e   :  { %696 = vmatpush1.bf16.msra.mxu0 %v1089_v39  ;;  %662 = vmatprep.subr.bf16.mxu1 %v1099_v42  ;;  %v1149_v39 = vld [vmem:[#allocation8 + $0x48] sm:$0xff]  }
  0x6f   :  { %697 = vmatprep.subr.bf16.mxu0 %v1097_v40 }
  0x71   :  { %663 = vmatpush1.bf16.msra.mxu1 %v1104_v45  ;;  %v1150_v45 = vld [vmem:[#allocation8 + $0x8] sm:$0xff]  }
  0x72   :  { %698 = vmatpush1.bf16.msra.mxu0 %v1095_v43  ;;  %664 = vmatprep.subr.bf16.mxu1 %v1105_v46 }
  0x73   :  { %699 = vmatprep.subr.bf16.mxu0 %v1103_v44 }
  0x75   :  { %665 = vmatpush1.bf16.msra.mxu1 %v1110_v49 }
  0x76   :  { %700 = vmatpush1.bf16.msra.mxu0 %v1101_v47  ;;  %666 = vmatprep.subr.bf16.mxu1 %v1111_v50 }
  0x77   :  { %701 = vmatprep.subr.bf16.mxu0 %v1109_v48  ;;  %v1151_v48 = vld [vmem:[#allocation8 + $0x50] sm:$0xff]  }
  0x79   :  { %667 = vmatpush1.bf16.msra.mxu1 %v1116_v53  ;;  %v1153_v53 = vld [vmem:[#allocation8 + $0x58] sm:$0xff]  }
  0x7a   :  { %702 = vmatpush1.bf16.msra.mxu0 %v1107_v51  ;;  %668 = vmatprep.subr.bf16.mxu1 %v1117_v54  ;;  %v1152_v51 = vld [vmem:[#allocation8 + $0x10] sm:$0xff]   ;;  %v1154_v54 = vld [vmem:[#allocation8 + $0x18] sm:$0xff]  }
  0x7b   :  { %703 = vmatprep.subr.bf16.mxu0 %v1115_v52 }
  0x7d   :  { %669 = vmatpush1.bf16.msra.mxu1 %v1122_v57  ;;  %v1157_v57 = vld [vmem:[#allocation8 + $0x68] sm:$0xff]  }
  0x7e   :  { %704 = vmatpush1.bf16.msra.mxu0 %v1113_v55  ;;  %670 = vmatprep.subr.bf16.mxu1 %v1123_v58  ;;  %v1155_v55 = vld [vmem:[#allocation8 + $0x60] sm:$0xff]   ;;  %v1158_v58 = vld [vmem:[#allocation8 + $0x28] sm:$0xff]  }
  0x7f   :  { %705 = vmatprep.subr.bf16.mxu0 %v1121_v56  ;;  %v1156_v56 = vld [vmem:[#allocation8 + $0x20] sm:$0xff]  }
  0x81   :  { %671 = vmatpush1.bf16.msra.mxu1 %v1128_v61  ;;  %v1161_v61 = vld [vmem:[#allocation8 + $0x78] sm:$0xff]  }
  0x82   :  { %706 = vmatpush1.bf16.msra.mxu0 %v1119_v59  ;;  %672 = vmatprep.subr.bf16.mxu1 %v1129_v63  ;;  %v1159_v59 = vld [vmem:[#allocation8 + $0x70] sm:$0xff]   ;;  %v303_v63 = vld [vmem:[%s1433_s4] sm:$0x3] }
  0x83   :  { %707 = vmatprep.subr.bf16.mxu0 %v1127_v60  ;;  %v1160_v60 = vld [vmem:[#allocation8 + $0x30] sm:$0xff]  }
  0x85   :  { %673 = vmatpush1.bf16.msra.mxu1 %v1134_v2 }
  0x86   :  { %708 = vmatpush1.bf16.msra.mxu0 %v1125_v62  ;;  %674 = vmatprep.subr.bf16.mxu1 %v1135_v3  ;;  %v1162_v62 = vld [vmem:[#allocation8 + $0x38] sm:$0xff]  }
  0x87   :  { %709 = vmatprep.subr.bf16.mxu0 %v1133_v0  ;;  %v304_v0 = vunpack.c.l.bf16 %v303_v63 }
  0x89   :  { %675 = vmatpush1.bf16.msra.mxu1 %v1140_v6  ;;  %v313_v3 = vrot.slane %v304_v0, %v92_v17  ;;  %v762_v17 = vld [vmem:[%s1435_s6] sm:$0x1] }
  0x8a   :  { %710 = vmatpush1.bf16.msra.mxu0 %v1131_v1  ;;  %1011 = vmatprep.subr.bf16.mxu1 %v1147_v11  ;;  %v309_v1 = vrot.slane %v304_v0, %v1393_v16  ;;  %v763_v23 = vunpack.c.l.bf16 %v762_v17 }
  0x8b   :  { %711 = vmatprep.subr.bf16.mxu0 %v1139_v4 }
  0x8c   :  { %v319_v6 = vrot.slane %v309_v1, %v1393_v16 }
  0x8e   :  { %712 = vmatpush1.bf16.msra.mxu0 %v1137_v5 }
  0x8f   :  { %713 = vmatprep.subr.bf16.mxu0 %v1143_v7 }
  0x92   :  { %714 = vmatpush1.bf16.msra.mxu0 %v1141_v8  ;;  %v323_v8 = vrot.slane %v313_v3, %v1393_v16 }
  0x93   :  { %715 = vmatprep.subr.bf16.mxu0 %v1146_v9 }
  0x96   :  { %716 = vmatpush1.bf16.msra.mxu0 %v1144_v10 }
 0x124   :  { %v183_v24 = vpop.f32.mrb[0].mxu0 }
 0x125   :  { %v184_v25 = vadd.f32 %v183_v24, %v109_v20  ;;  %v185_v26 = vpop.f32.mrb[1].mxu0 }
 0x126   :  { %v186_v28 = vadd.f32 %v185_v26, %v113_v22  ;;  %v187_v29 = vpop.f32.mrb[2].mxu0 }
 0x127   :  { %v231_v31 = vmax.f32 %v184_v25, 0.0  ;;  %v188_v32 = vpop.f32.mrb[3].mxu0  ;;  %v767_v25 = vrot.slane %v763_v23, %v1393_v16 }
 0x128   :  { %v232_v33 = vmax.f32 %v186_v28, 0.0 }
 0x129   :  { %v235_v38 = vpack.c.bf16 %v231_v31, %v231_v31 }
 0x12a   :  { %v236_v35 = vpack.c.bf16 %v232_v33, %v232_v33 }
 0x12c   :  { %v224_v40 = vpop.f32.mrb[4].mxu0  ;;  %676 = vmatprep.mubr.bf16.mxu1 %v236_v35 }
 0x12d   :  { %v225_v41 = vadd.f32 %v224_v40, %v117_v34  ;;  %v226_v42 = vpop.f32.mrb[5].mxu0  ;;  %677 = vmatmul.mubr.bf16.vlgmr.msra.gmra.mrb[0].mxu1 %v235_v38 }
 0x12e   :  { %v227_v43 = vadd.f32 %v226_v42, %v121_v36  ;;  %v228_v44 = vpop.f32.mrb[6].mxu0  ;;  %1012 = vmatpush3.bf16.msra.mxu1 %v1148_v37 }
 0x12f   :  { %v233_v46 = vmax.f32 %v225_v41, 0.0  ;;  %v229_v47 = vpop.f32.mrb[7].mxu0  ;;  %1013 = vmatprep.subr.bf16.mxu1 %v1149_v39 }
 0x130   :  { %v234_v49 = vmax.f32 %v227_v43, 0.0 }
 0x131   :  { %v237_v52 = vpack.c.bf16 %v233_v46, %v233_v46 }
 0x132   :  { %v238_v50 = vpack.c.bf16 %v234_v49, %v234_v49  ;;  %1014 = vmatpush3.bf16.msra.mxu1 %v1150_v45 }
 0x133   :  { %1015 = vmatprep.subr.bf16.mxu1 %v1151_v48 }
 0x134   :  { %717 = vmatprep.mubr.bf16.mxu0 %v238_v50 }
 0x135   :  { %718 = vmatmul.mubr.bf16.vlgmr.msra.gmra.mrb[8].mxu0 %v237_v52 }
 0x136   :  { %1016 = vmatpush3.bf16.msra.mxu1 %v1152_v51 }
 0x137   :  { %1017 = vmatprep.subr.bf16.mxu1 %v1153_v53 }
 0x13a   :  { %1018 = vmatpush3.bf16.msra.mxu1 %v1154_v54 }
 0x13b   :  { %1019 = vmatprep.subr.bf16.mxu1 %v1155_v55 }
 0x13e   :  { %1020 = vmatpush3.bf16.msra.mxu1 %v1156_v56 }
 0x13f   :  { %1021 = vmatprep.subr.bf16.mxu1 %v1157_v57 }
 0x142   :  { %1022 = vmatpush3.bf16.msra.mxu1 %v1158_v58 }
 0x143   :  { %1023 = vmatprep.subr.bf16.mxu1 %v1159_v59 }
 0x146   :  { %1024 = vmatpush3.bf16.msra.mxu1 %v1160_v60 }
 0x147   :  { %1025 = vmatprep.subr.bf16.mxu1 %v1161_v61 }
 0x14a   :  { %1026 = vmatpush3.bf16.msra.mxu1 %v1162_v62 }
 0x200   :  { %v678_v2 = vpop.f32.mrb[0].mxu1 }
 0x201   :  { %v680_v4 = vpop.f32.mrb[1].mxu1  ;;  %v679_v9 = vadd.f32 %v678_v2, %v319_v6 }
 0x202   :  { %v682_v5 = vpop.f32.mrb[2].mxu1  ;;  %v681_v10 = vadd.f32 %v680_v4, %v323_v8 }
 0x203   :  { %v683_v7 = vpop.f32.mrb[3].mxu1 }
 0x208   :  { %v719_v11 = vpop.f32.mrb[8].mxu0 }
 0x209   :  { %v720_v12 = vadd.f32 %v719_v11, %v679_v9  ;;  %v721_v14 = vpop.f32.mrb[9].mxu0 }
 0x20a   :  { %v722_v15 = vadd.f32 %v721_v14, %v681_v10  ;;  %v723_v18 = vpop.f32.mrb[10].mxu0 }
 0x20b   :  { %v726_v19 = vmax.f32 %v720_v12, 0.0  ;;  %v724_v20 = vpop.f32.mrb[11].mxu0 }
 0x20c   :  { %v727_v21 = vmax.f32 %v722_v15, 0.0 }
 0x20d   :  { %v728_v13 = vpack.c.bf16 %v726_v19, %v726_v19 }
 0x20e   :  { %v729_v22 = vpack.c.bf16 %v727_v21, %v727_v21 }
 0x210   :  { %896 = vmatprep.mubr.bf16.mxu1 %v729_v22 }
 0x211   :  { %897 = vmatmul.mubr.bf16.vlgmr.msra.gmra.mrb[4].mxu1 %v728_v13 }
 0x2e4   :  { %v1027_v24 = vpop.f32.mrb[4].mxu1 }
 0x2e5   :  { %v1028_v26 = vpop.f32.mrb[5].mxu1 }
 0x2e6   :  { %v1029_v27 = vadd.f32 %v1028_v26, %v1027_v24  ;;  %v1030_v28 = vpop.f32.mrb[6].mxu1 }
 0x2e7   :  { %v1031_v29 = vpop.f32.mrb[7].mxu1 }
 0x2e8   :  { %v899_v30 = vadd.f32 %v1029_v27, %v767_v25 }
 0x2ea   :  { %1163 = vtanh.f32 %v899_v30 }
 0x2f4   :  { %v1164_v31 = vpop.eup %1163 }
 0x2f5   :  { %905 = vst [vmem:[#allocation10] sm:$0xff] %v1164_v31 }
 0x2f6   :  { %1264 = shalt.err (!%p1261_p8)
}
 0x2f7   :  { %s1265_s11 = scalar_lea.hbm %s1436_s7, 128 }
 0x2f8   :  { %p1266_p9 = scmp.ne.s32.totalorder %s1436_s7, %s1265_s11  ;;  %p1269_p10 = scmp.lt.u32.totalorder %s1265_s11, %s1436_s7 }
 0x2fa   :  { %p1271_p11 = pnand %p1269_p10, %p1266_p9 }
 0x2fc   :  { %1274 = shalt.err (!%p1271_p11)
}
 0x2fd   :  { %915 = dma.vmem_to_hbm [thread:$0]  %s913_s8, 128, %s1436_s7, [#allocation4]  }
 0x2fe   :  { %1281 = dma.done.wait [#allocation4], 128  }
 0x2ff   :  { %1282 = vsyncadd [#allocation4], 4294967168 }
 0x300   :  { %919 = vsyncpa [#allocation3], 1 }
 0x301   :  { %920 = vsyncpa [#allocation6], 1 }
 0x302   :  { %921 = vsyncpa [#allocation9], 1 }
 0x303   :  { %922 = vsyncpa [#allocation4], 1 }

</bundles_post_ra>
